<compile_context>
chip_gen: v7x
topology: tpu7x:2x2x1
jax: 0.10.0
libtpu: 0.0.40
codegen_flags: <defaults>
</compile_context>

<pallas_src>
import functools

import jax
import jax.numpy as jnp
import numpy as np
from jax.experimental import pallas as pl
from jax.experimental.pallas import tpu as pltpu


# ----------------------------- elementwise helpers -----------------------------

def _leaky_relu(x, alpha):
    return jnp.where(x > 0, x, alpha * x)


def _elu(x):
    # exp(min(x, 0)) avoids overflow of exp for large positive x before the select.
    return jnp.where(x > 0, x, jnp.exp(jnp.minimum(x, 0.0)) - 1.0)


def _masked_softmax_rows(scores, bias_f32):
    e = scores + bias_f32
    m = jnp.max(e, axis=1, keepdims=True)
    p = jnp.exp(e - m)
    return p / jnp.sum(p, axis=1, keepdims=True)


# ---------------------------------- kernels ------------------------------------

def project_kernel(x_ref, w_ref, amat_ref, wh_ref, f_ref):
    """Row-tiled fused projection.

    wh = x_tile @ W_all   (all heads in one lane-dense MXU matmul)
    f  = wh @ A           (per-head attention-vector dots, also on the MXU)
    """
    wh = jnp.dot(x_ref[...], w_ref[...], preferred_element_type=jnp.float32)
    wh_ref[...] = wh
    f_ref[...] = jnp.dot(wh, amat_ref[...], preferred_element_type=jnp.float32)


def heads_attn_kernel(fq_ref, fk_ref, bias_ref, wh_ref, out_ref, *, nheads, nhid, alpha):
    # fq_ref: (tq, 2H)   fk_ref: (N, 2H)   bias_ref: (tq, N) bf16
    # wh_ref: (N, H*nhid) full              out_ref: (tq, H*nhid)
    bias = bias_ref[...].astype(jnp.float32)
    fq = fq_ref[...]
    fk = fk_ref[...]
    wh_all = wh_ref[...]
    outs = []
    for h in range(nheads):                                # static unroll over heads
        f1 = fq[:, 2 * h:2 * h + 1]                        # (tq, 1)
        f2 = fk[:, 2 * h + 1:2 * h + 2]                    # (N, 1)
        s = _leaky_relu(f1 + jnp.transpose(f2), alpha)     # (tq, N)
        att = _masked_softmax_rows(s, bias)
        wh_h = wh_all[:, h * nhid:(h + 1) * nhid]          # (N, nhid)
        hp = jnp.dot(att, wh_h, preferred_element_type=jnp.float32)
        outs.append(_elu(hp))                              # concat=True -> F.elu in layer
    out_ref[...] = jnp.concatenate(outs, axis=1)           # lane-dense concatenated store


def out_attn_kernel(fq_ref, fk_ref, bias_ref, wh_ref, out_ref, *, alpha):
    # fq_ref: (tq, 2)   fk_ref: (N, 2)   bias_ref: (tq, N) bf16
    # wh_ref: (N, C)    out_ref: (tq, C)
    bias = bias_ref[...].astype(jnp.float32)
    f1 = fq_ref[:, 0:1]
    f2 = fk_ref[:, 1:2]
    s = _leaky_relu(f1 + jnp.transpose(f2), alpha)
    att = _masked_softmax_rows(s, bias)
    hp = jnp.dot(att, wh_ref[...], preferred_element_type=jnp.float32)
    y = _elu(hp)                                           # F.elu in GAT.forward
    m = jnp.max(y, axis=1, keepdims=True)
    lse = m + jnp.log(jnp.sum(jnp.exp(y - m), axis=1, keepdims=True))
    out_ref[...] = y - lse                                 # log_softmax over dim=1


# --------------------------------- wrappers -------------------------------------

def _pick_row_tile(n, target=128):
    if n <= target:
        return n
    t = target
    while n % t:
        t -= 1
    return t


def _projection(x, w, a_mat, *, tile_rows):
    n, k = x.shape
    m = w.shape[1]
    p = a_mat.shape[1]
    return pl.pallas_call(
        project_kernel,
        out_shape=(jax.ShapeDtypeStruct((n, m), jnp.float32),
                   jax.ShapeDtypeStruct((n, p), jnp.float32)),
        grid=(n // tile_rows,),
        in_specs=[
            pl.BlockSpec((tile_rows, k), lambda i: (i, 0)),
            pl.BlockSpec((k, m), lambda i: (0, 0)),
            pl.BlockSpec((m, p), lambda i: (0, 0)),
        ],
        out_specs=(
            pl.BlockSpec((tile_rows, m), lambda i: (i, 0)),
            pl.BlockSpec((tile_rows, p), lambda i: (i, 0)),
        ),
        compiler_params=pltpu.CompilerParams(dimension_semantics=("parallel",)),
    )(x, w, a_mat)


def _heads_attention(f_all, bias, wh_all, *, nheads, nhid, alpha, tile_rows):
    n = bias.shape[0]
    return pl.pallas_call(
        functools.partial(heads_attn_kernel, nheads=nheads, nhid=nhid, alpha=alpha),
        out_shape=jax.ShapeDtypeStruct((n, nheads * nhid), jnp.float32),
        grid=(n // tile_rows,),
        in_specs=[
            pl.BlockSpec((tile_rows, 2 * nheads), lambda i: (i, 0)),   # f rows (this tile)
            pl.BlockSpec((n, 2 * nheads), lambda i: (0, 0)),           # f for all nodes
            pl.BlockSpec((tile_rows, n), lambda i: (i, 0)),            # bf16 mask bias rows
            pl.BlockSpec((n, nheads * nhid), lambda i: (0, 0)),        # Wh for all nodes
        ],
        out_specs=pl.BlockSpec((tile_rows, nheads * nhid), lambda i: (i, 0)),
        compiler_params=pltpu.CompilerParams(dimension_semantics=("parallel",)),
    )(f_all, f_all, bias, wh_all)


def _out_attention(f_out, bias, wh_out, *, alpha, tile_rows):
    n = bias.shape[0]
    nclass = wh_out.shape[1]
    return pl.pallas_call(
        functools.partial(out_attn_kernel, alpha=alpha),
        out_shape=jax.ShapeDtypeStruct((n, nclass), jnp.float32),
        grid=(n // tile_rows,),
        in_specs=[
            pl.BlockSpec((tile_rows, 2), lambda i: (i, 0)),
            pl.BlockSpec((n, 2), lambda i: (0, 0)),
            pl.BlockSpec((tile_rows, n), lambda i: (i, 0)),
            pl.BlockSpec((n, nclass), lambda i: (0, 0)),
        ],
        out_specs=pl.BlockSpec((tile_rows, nclass), lambda i: (i, 0)),
        compiler_params=pltpu.CompilerParams(dimension_semantics=("parallel",)),
    )(f_out, f_out, bias, wh_out)


def gat_forward(x, adj, w_heads, a_heads, w_out, a_out, *, alpha):
    nheads, nfeat, nhid = w_heads.shape
    n = x.shape[0]
    nclass = w_out.shape[1]
    tile_rows = _pick_row_tile(n)

    # Additive attention mask: 0 where edge, -9e15 where no edge (bf16 stream).
    bias = jnp.where(adj > 0, 0.0, -9e15).astype(jnp.bfloat16)

    # Fused per-head weights: W_all (Fin, H*Fh), block-diagonal A (H*Fh, 2H).
    w_all = jnp.transpose(w_heads, (1, 0, 2)).reshape(nfeat, nheads * nhid)
    a_mat = jnp.zeros((nheads * nhid, 2 * nheads), jnp.float32)
    for h in range(nheads):
        a_mat = a_mat.at[h * nhid:(h + 1) * nhid, 2 * h].set(a_heads[h, :nhid])
        a_mat = a_mat.at[h * nhid:(h + 1) * nhid, 2 * h + 1].set(a_heads[h, nhid:])

    # ---- multi-head attention layer ----
    wh_all, f_all = _projection(x, w_all, a_mat, tile_rows=tile_rows)
    h_cat = _heads_attention(f_all, bias, wh_all, nheads=nheads, nhid=nhid,
                             alpha=alpha, tile_rows=tile_rows)

    # ---- output attention layer + elu + log_softmax ----
    a_out_mat = a_out.reshape(2, nclass).T                      # (C, 2)
    wh_out, f_out = _projection(h_cat, w_out, a_out_mat, tile_rows=tile_rows)
    out = _out_attention(f_out, bias, wh_out, alpha=alpha, tile_rows=tile_rows)
    return out


# --------------------------------- reference ------------------------------------

def gat_reference(x, adj, w_heads, a_heads, w_out, a_out, *, alpha):
    """Pure-JAX reference mirroring the PyTorch forward (eval mode)."""
    def layer(h, w, a, concat):
        fh = w.shape[1]
        wh = h @ w
        e = _leaky_relu(wh @ a[:fh, None] + (wh @ a[fh:, None]).T, alpha)
        e = jnp.where(adj > 0, e, -9e15)
        att = jax.nn.softmax(e, axis=1)
        hp = att @ wh
        return _elu(hp) if concat else hp

    heads = [layer(x, w_heads[i], a_heads[i], True) for i in range(w_heads.shape[0])]
    h_cat = jnp.concatenate(heads, axis=1)
    y = _elu(layer(h_cat, w_out, a_out[0], False))
    return jax.nn.log_softmax(y, axis=1)


if __name__ == "__main__":
    # Small shapes consistent with the module.
    N, NFEAT, NHID, NCLASS, NHEADS = 16, 32, 16, 8, 4
    ALPHA = 0.2  # LeakyReLU negative slope

    key = jax.random.PRNGKey(0)
    k_x, k_adj, k_w, k_a, k_wo, k_ao = jax.random.split(key, 6)

    x = jax.random.normal(k_x, (N, NFEAT), dtype=jnp.float32)
    adj = (jax.random.uniform(k_adj, (N, N)) > 0.5).astype(jnp.float32)
    adj = jnp.maximum(adj, jnp.eye(N, dtype=jnp.float32))  # self-loops

    # Deterministic parameter init (xavier-uniform-like).
    def xavier(k, shape):
        fan_in, fan_out = shape[-2], shape[-1]
        lim = (6.0 / (fan_in + fan_out)) ** 0.5
        return jax.random.uniform(k, shape, jnp.float32, -lim, lim)

    w_heads = xavier(k_w, (NHEADS, NFEAT, NHID))
    a_heads = jax.random.uniform(k_a, (NHEADS, 2 * NHID), jnp.float32, -0.3, 0.3)
    w_out = xavier(k_wo, (NHEADS * NHID, NCLASS))
    a_out = jax.random.uniform(k_ao, (1, 2 * NCLASS), jnp.float32, -0.3, 0.3)

    out = gat_forward(x, adj, w_heads, a_heads, w_out, a_out, alpha=ALPHA)
    out = jax.block_until_ready(out)

    ref = gat_reference(x, adj, w_heads, a_heads, w_out, a_out, alpha=ALPHA)
    np.testing.assert_allclose(np.asarray(out), np.asarray(ref), rtol=1e-4, atol=1e-4)

    print("KERNEL_OK")
</pallas_src>

<mosaic_0001>
module attributes {stable_mosaic.version = 11 : i64} {
  func.func @project_kernel(%arg0: i32, %arg1: memref<16x32xf32, #tpu.memory_space<vmem>>, %arg2: memref<32x64xf32, #tpu.memory_space<vmem>>, %arg3: memref<64x8xf32, #tpu.memory_space<vmem>>, %arg4: memref<16x64xf32, #tpu.memory_space<vmem>>, %arg5: memref<16x8xf32, #tpu.memory_space<vmem>>) attributes {dimension_semantics = [#tpu.dimension_semantics<parallel>], iteration_bounds = array<i64: 1>, scalar_prefetch = 0 : i64, scratch_operands = 0 : i64, tpu.core_type = #tpu.core_type<tc>, window_params = [{transform_indices = @transform_0, window_bounds = array<i64: 16, 32>}, {pipeline_mode = #tpu.pipeline_mode<synchronous>, transform_indices = @transform_1, window_bounds = array<i64: 32, 64>}, {pipeline_mode = #tpu.pipeline_mode<synchronous>, transform_indices = @transform_2, window_bounds = array<i64: 64, 8>}, {transform_indices = @transform_3, window_bounds = array<i64: 16, 64>}, {transform_indices = @transform_4, window_bounds = array<i64: 16, 8>}]} {
    %c0 = arith.constant 0 : index
    %c0_0 = arith.constant 0 : index
    %0 = vector.load %arg1[%c0, %c0_0] : memref<16x32xf32, #tpu.memory_space<vmem>>, vector<16x32xf32>
    %c0_1 = arith.constant 0 : index
    %c0_2 = arith.constant 0 : index
    %1 = vector.load %arg2[%c0_1, %c0_2] : memref<32x64xf32, #tpu.memory_space<vmem>>, vector<32x64xf32>
    %cst = arith.constant dense<0.000000e+00> : vector<16x64xf32>
    %2 = tpu.matmul %0, %1, %cst {dimension_numbers = #tpu.dot_dimension_numbers<[1], [0], [0], [1], [0, 0, 1, 1], [], []>} : vector<16x32xf32>, vector<32x64xf32>, vector<16x64xf32> -> vector<16x64xf32>
    %c0_3 = arith.constant 0 : index
    %c0_4 = arith.constant 0 : index
    %3 = vector.load %arg4[%c0_3, %c0_4] : memref<16x64xf32, #tpu.memory_space<vmem>>, vector<16x64xf32>
    tpu.vector_store %arg4[%c0_3, %c0_4], %2 {strides = array<i32>} : memref<16x64xf32, #tpu.memory_space<vmem>>, vector<16x64xf32>,
    %c0_5 = arith.constant 0 : index
    %c0_6 = arith.constant 0 : index
    %4 = vector.load %arg3[%c0_5, %c0_6] : memref<64x8xf32, #tpu.memory_space<vmem>>, vector<64x8xf32>
    %cst_7 = arith.constant dense<0.000000e+00> : vector<16x8xf32>
    %5 = tpu.matmul %2, %4, %cst_7 {dimension_numbers = #tpu.dot_dimension_numbers<[1], [0], [0], [1], [0, 0, 1, 1], [], []>} : vector<16x64xf32>, vector<64x8xf32>, vector<16x8xf32> -> vector<16x8xf32>
    %c0_8 = arith.constant 0 : index
    %c0_9 = arith.constant 0 : index
    %6 = vector.load %arg5[%c0_8, %c0_9] : memref<16x8xf32, #tpu.memory_space<vmem>>, vector<16x8xf32>
    tpu.vector_store %arg5[%c0_8, %c0_9], %5 {strides = array<i32>} : memref<16x8xf32, #tpu.memory_space<vmem>>, vector<16x8xf32>,
    return
  }
  func.func @transform_0(%arg0: i32) -> (i32, i32) {
    %c0_i32 = arith.constant 0 : i32
    %c0_i32_0 = arith.constant 0 : i32
    return %arg0, %c0_i32 : i32, i32
  }
  func.func @transform_1(%arg0: i32) -> (i32, i32) {
    %c0_i32 = arith.constant 0 : i32
    %c0_i32_0 = arith.constant 0 : i32
    %c0_i32_1 = arith.constant 0 : i32
    return %c0_i32, %c0_i32_0 : i32, i32
  }
  func.func @transform_2(%arg0: i32) -> (i32, i32) {
    %c0_i32 = arith.constant 0 : i32
    %c0_i32_0 = arith.constant 0 : i32
    %c0_i32_1 = arith.constant 0 : i32
    return %c0_i32, %c0_i32_0 : i32, i32
  }
  func.func @transform_3(%arg0: i32) -> (i32, i32) {
    %c0_i32 = arith.constant 0 : i32
    %c0_i32_0 = arith.constant 0 : i32
    return %arg0, %c0_i32 : i32, i32
  }
  func.func @transform_4(%arg0: i32) -> (i32, i32) {
    %c0_i32 = arith.constant 0 : i32
    %c0_i32_0 = arith.constant 0 : i32
    return %arg0, %c0_i32 : i32, i32
  }
}

</mosaic_0001>

<bundles_post_ra>
// kernel: tpu_custom_call.1
= control target key start
LH: loop header
LB: loop body
LE: loop exit
PB: predicated region body
PF: predicated region fallthrough
CT: control target
= control target key end

     0   :  { %vm23_vm0 = vcmask 261120   ;;  %s411_s0 = inlined_call_operand.vmem [shape: f32[16,32], index: 0, kind: input, shape index: {}]   ;;  %s412_s1 = inlined_call_operand.vmem [shape: f32[32,64], index: 1, kind: input, shape index: {}]   ;;  %s413_s2 = inlined_call_operand.vmem [shape: f32[64,8], index: 2, kind: input, shape index: {}]   ;;  %s414_s3 = inlined_call_operand.hbm [shape: f32[16,64], index: 3, kind: output, shape index: {0}]   ;;  %s415_s4 = inlined_call_operand.vmem [shape: f32[16,8], index: 4, kind: output, shape index: {1}]  }
   0x1   :  { %v19_v0 = vld [vmem:[%s412_s1] sm:$0xff]  ;;  %v20_v1 = vld [vmem:[%s412_s1 + $0x8] sm:$0xff]  ;;  %v21_v2 = vld [vmem:[%s412_s1 + $0x10] sm:$0xff] }
   0x2   :  { %v270_v3 = vpack.c.bf16 %v20_v1, %v19_v0  ;;  %v22_v4 = vld [vmem:[%s412_s1 + $0x18] sm:$0xff]  ;;  %v17_v5 = vld [vmem:[%s411_s0] sm:$0xff]  ;;  %v109_v8 = vld [vmem:[%s413_s2 + $0x8] sm:$0xff] }
   0x3   :  { %v274_v6 = vpack.c.bf16 %v22_v4, %v21_v2  ;;  %248 = vmatprep.mubr.msk.f32.mxu0 %vm23_vm0, %v17_v5  ;;  %v108_v7 = vld [vmem:[%s413_s2] sm:$0xff]  ;;  %v110_v9 = vld [vmem:[%s413_s2 + $0x10] sm:$0xff]  ;;  %v111_v11 = vld [vmem:[%s413_s2 + $0x18] sm:$0xff] }
   0x4   :  { %271 = vmatprep.subr.bf16.mxu0 %v270_v3  ;;  %v278_v10 = vpack.c.bf16 %v109_v8, %v108_v7  ;;  %v282_v12 = vpack.c.bf16 %v111_v11, %v110_v9  ;;  %v112_v13 = vld [vmem:[%s413_s2 + $0x20] sm:$0xff]  ;;  %v113_v14 = vld [vmem:[%s413_s2 + $0x28] sm:$0xff] }
   0x5   :  { %273 = vmatpush3.bf16.msra.mxu0 %v270_v3 }
   0x6   :  { %10 = vsyncpa [#allocation3], 0  ;;  %275 = vmatprep.subr.bf16.mxu0 %v274_v6  ;;  %279 = vmatprep.subr.bf16.mxu1 %v278_v10  ;;  %v286_v15 = vpack.c.bf16 %v113_v14, %v112_v13  ;;  %v18_v16 = vld [vmem:[%s411_s0 + $0x8] sm:$0xff]  ;;  %v114_v17 = vld [vmem:[%s413_s2 + $0x30] sm:$0xff]  ;;  %vm105_vm1 = vcmask 523264   ;;  %s321_s0 = smov [#allocation2]  }
   0x7   :  { %281 = vmatpush3.bf16.msra.mxu1 %v278_v10  ;;  %v115_v18 = vld [vmem:[%s413_s2 + $0x38] sm:$0xff]  ;;  %s205_s16 = sshll.u32 %s321_s0, 4  ;;  %s206_s16 = int_to_ptr.vmem [resolvable:$true] %s205_s16 }
   0x8   :  { %283 = vmatprep.subr.bf16.mxu1 %v282_v12  ;;  %v290_v19 = vpack.c.bf16 %v115_v18, %v114_v17  ;;  %s297_s17 = scalar_lea.vmem %s206_s16, 256  ;;  %p302_p1 = scmp.lt.s32.totalorder %s206_s16, %s206_s16 }
   0x9   :  { %277 = vmatpush3.bf16.msra.mxu0 %v274_v6  ;;  %p298_p0 = scmp.ne.s32.totalorder %s206_s16, %s297_s17  ;;  %p303_p2 = scmp.lt.s32.totalorder %s297_s17, %s297_s17 }
   0xb   :  { %285 = vmatpush3.bf16.msra.mxu1 %v282_v12  ;;  %p304_p3 = por %p303_p2, %p302_p1 }
   0xc   :  { %249 = vmatmul.mubr.msk.f32.vlgmr.msra.gmra.mrb[0].mxu0 %vm23_vm0, %v18_v16  ;;  %287 = vmatprep.subr.bf16.mxu1 %v286_v15 }
   0xd   :  { %p305_p4 = pnand %p304_p3, %p298_p0 }
   0xf   :  { %289 = vmatpush3.bf16.msra.mxu1 %v286_v15 }
  0x10   :  { %291 = vmatprep.subr.bf16.mxu1 %v290_v19 }
  0x13   :  { %293 = vmatpush3.bf16.msra.mxu1 %v290_v19 }
  0xdf   :  { %v250_v20 = vpop.f32.mrb[0].mxu0 }
  0xe0   :  { %107 = vst.msk [vmem:[#allocation2 + $0x8] sm:$0xff] %vm105_vm1, %v250_v20  ;;  %v96_v21 = vpop.f32.mrb[1].mxu0 }
  0xe1   :  { %106 = vst.msk [vmem:[#allocation2] sm:$0xff] %vm105_vm1, %v96_v21  ;;  %267 = vmatprep.mubr.msk.f32.mxu1 %vm105_vm1, %v96_v21 }
  0xe2   :  { %268 = vmatmul.mubr.msk.f32.vlgmr.msra.gmra.mrb[0].mxu1 %vm105_vm1, %v250_v20 }
  0xe3   :  { %308 = shalt.err (!%p305_p4)
}
  0xe4   :  { %s309_s19 = scalar_lea.hbm %s414_s3, 256 }
  0xe5   :  { %p310_p5 = scmp.ne.s32.totalorder %s414_s3, %s309_s19  ;;  %p313_p6 = scmp.lt.u32.totalorder %s309_s19, %s414_s3 }
  0xe7   :  { %p315_p7 = pnand %p313_p6, %p310_p5 }
  0xe9   :  { %318 = shalt.err (!%p315_p7)
}
  0xea   :  { %s322_s24 = smov 128   ;;  %s323_s25 = smov 8   ;;  %vm197_vm2 = vcmask 64512  }
  0xeb   :  { %211 = dma.vmem_to_hbm [thread:$0]  %s206_s16, 256, %s414_s3, [#allocation3], %s322_s24, %s322_s24, %s323_s25  }
 0x1b5   :  { %v269_v22 = vpop.f32.mrb[0].mxu1 }
 0x1b6   :  { %199 = vst.msk [vmem:[%s415_s4 + $0x8] sm:$0xff] %vm197_vm2, %v269_v22  ;;  %v188_v23 = vpop.f32.mrb[1].mxu1 }
 0x1b7   :  { %198 = vst.msk [vmem:[%s415_s4] sm:$0xff] %vm197_vm2, %v188_v23 }
 0x1b8   :  { %319 = dma.done.wait [#allocation3], 256  }
 0x1b9   :  { %320 = vsyncadd [#allocation3], 4294967040 }
 0x1ba   :  { %219 = vsyncpa [#allocation3], 1 }

</bundles_post_ra>
